<compile_context>
chip_gen: v7x
topology: tpu7x:2x2x1
jax: 0.10.0
libtpu: 0.0.40
codegen_flags: <defaults>
</compile_context>

<pallas_src>
import jax
import jax.numpy as jnp
from jax.experimental import pallas as pl
from jax.experimental.pallas import tpu as pltpu

EMBED_DIM = 32          # self.embed_dim
CAT = 2 * EMBED_DIM     # 64
HID2 = 16               # w_uv2 output
BN_EPS = 1e-5
LANE = 128

# 128-aligned column layout of the transposed-weight slab, shape (CAT, SLAB_W).
C_W1 = 0 * LANE    # W1^T  block-diag (w_ur1|w_vr1), bn1/bn2 folded  rows[:64] cols[  0: 64)
C_W2 = 1 * LANE    # W2^T  block-diag (w_ur2|w_vr2)                  rows[:64] cols[128:192)
C_W3 = 2 * LANE    # W3^T  w_uv1, bn3 folded                         rows[:32] cols[256:320)
C_W4 = 3 * LANE    # W4^T  w_uv2, bn4 folded                         rows[:16] cols[384:416)
C_W5 = 4 * LANE    # W5^T  w_uv3                                     rows[:1 ] cols[512:528)
SLAB_W = 5 * LANE  # 640

NBIAS = 8          # bias slab lane width (columns 0..4 used)


# ----------------------------------------------------------------------------
# Pallas kernel: whole MLP head for one batch tile (batch on lanes).
# ----------------------------------------------------------------------------
def graphrec_kernel(x_ref, w_ref, b_ref, out_ref):
    # x_ref : (CAT, tb)     compute dtype — concat(embeds_u, embeds_v)^T
    # w_ref : (CAT, SLAB_W) compute dtype — transposed weights, 128-aligned cols
    # b_ref : (CAT, NBIAS)  float32       — bias column vectors, one per layer
    # out_ref: (1, tb)      float32       — lane-dense scores

    def mm(wt, h):
        # feed the MXU in the weight dtype (bf16 or f32), accumulate in f32
        return jnp.dot(wt, h.astype(wt.dtype), preferred_element_type=jnp.float32)

    # static ref slices (all start at 128-aligned lane offsets) -> free windows
    w1t = w_ref[:, C_W1:C_W1 + CAT]                 # (64, 64)
    w2t = w_ref[:, C_W2:C_W2 + CAT]                 # (64, 64)
    w3t = w_ref[:EMBED_DIM, C_W3:C_W3 + CAT]        # (32, 64)
    w4t = w_ref[:HID2, C_W4:C_W4 + EMBED_DIM]       # (16, 32)
    w5t = w_ref[:HID2, C_W5:C_W5 + HID2]            # (16, 16) row 0 = w_uv3^T, rest 0

    b1 = b_ref[:, 0:1]                              # (64, 1)
    b2 = b_ref[:, 1:2]                              # (64, 1)
    b3 = b_ref[:EMBED_DIM, 2:3]                     # (32, 1)
    b4 = b_ref[:HID2, 3:4]                          # (16, 1)
    b5 = b_ref[:1, 4:5]                             # (1, 1)

    x0 = x_ref[...]                                 # (64, tb) compute dtype, no casts

    # merged user/item tower, layer 1: relu(bn1(w_ur1 eu)) | relu(bn2(w_vr1 ev))
    h1 = jnp.maximum(mm(w1t, x0) + b1, 0.0)         # (64, tb) f32
    # dropout(eval) = identity; layer 2: w_ur2 | w_vr2
    h2 = mm(w2t, h1) + b2                           # (64, tb) = cat(x_u, x_v)^T
    # x = relu(bn3(w_uv1(cat(x_u, x_v))))
    h3 = jnp.maximum(mm(w3t, h2) + b3, 0.0)         # (32, tb)
    # x = relu(bn4(w_uv2(x)))
    h4 = jnp.maximum(mm(w4t, h3) + b4, 0.0)         # (16, tb)
    # scores = w_uv3(x)  -> lane-dense (1, tb)
    s = mm(w5t, h4)[0:1, :] + b5                    # (1, tb)
    out_ref[...] = s.astype(out_ref.dtype)


# ----------------------------------------------------------------------------
# Host-side parameter folding / packing (BN fold + block-diag merge + slabs).
# ----------------------------------------------------------------------------
def _fold_bn(w, b, bn):
    gamma, beta, mean, var = bn[0], bn[1], bn[2], bn[3]
    s = gamma * jax.lax.rsqrt(var + BN_EPS)
    return w * s[None, :], (b - mean[None, :]) * s[None, :] + beta[None, :]


def pack_params(p):
    D, H = EMBED_DIM, HID2
    w_ur1, b_ur1 = _fold_bn(p["w_ur1"], p["b_ur1"], p["bn1"])
    w_vr1, b_vr1 = _fold_bn(p["w_vr1"], p["b_vr1"], p["bn2"])
    w_uv1, b_uv1 = _fold_bn(p["w_uv1"], p["b_uv1"], p["bn3"])
    w_uv2, b_uv2 = _fold_bn(p["w_uv2"], p["b_uv2"], p["bn4"])

    w_slab = jnp.zeros((CAT, SLAB_W), jnp.float32)
    # layer 1: block-diagonal, BN folded, transposed
    w_slab = w_slab.at[:D, C_W1:C_W1 + D].set(w_ur1.T)
    w_slab = w_slab.at[D:, C_W1 + D:C_W1 + CAT].set(w_vr1.T)
    # layer 2: block-diagonal, transposed
    w_slab = w_slab.at[:D, C_W2:C_W2 + D].set(p["w_ur2"].T)
    w_slab = w_slab.at[D:, C_W2 + D:C_W2 + CAT].set(p["w_vr2"].T)
    # layers 3/4/5, transposed
    w_slab = w_slab.at[:D, C_W3:C_W3 + CAT].set(w_uv1.T)
    w_slab = w_slab.at[:H, C_W4:C_W4 + D].set(w_uv2.T)
    w_slab = w_slab.at[:1, C_W5:C_W5 + H].set(p["w_uv3"].T)

    b_slab = jnp.zeros((CAT, NBIAS), jnp.float32)
    b_slab = b_slab.at[:D, 0].set(b_ur1[0])
    b_slab = b_slab.at[D:, 0].set(b_vr1[0])
    b_slab = b_slab.at[:D, 1].set(p["b_ur2"][0])
    b_slab = b_slab.at[D:, 1].set(p["b_vr2"][0])
    b_slab = b_slab.at[:D, 2].set(b_uv1[0])
    b_slab = b_slab.at[:H, 3].set(b_uv2[0])
    b_slab = b_slab.at[:1, 4].set(p["b_uv3"][0])
    return w_slab, b_slab


def _round_up(x, m):
    return ((x + m - 1) // m) * m


def graphrec_forward(embeds_u, embeds_v, params, *, tb=2048,
                     compute_dtype=jnp.bfloat16):
    """Pallas-backed GraphRec.forward (eval mode). Returns scores of shape (B,)."""
    B, D = embeds_u.shape
    assert D == EMBED_DIM

    w_slab, b_slab = pack_params(params)
    w_slab = w_slab.astype(compute_dtype)

    # batch lives on lanes -> tiles are multiples of 128
    tb_req = max(LANE, _round_up(tb, LANE))
    n_lane_tiles = _round_up(B, LANE) // LANE
    # keep >=2 grid steps when the batch spans >=2 lane tiles (v7x megacore)
    tb_cap = LANE * max(1, (n_lane_tiles + 1) // 2) if n_lane_tiles >= 2 else LANE
    tb_eff = min(tb_req, tb_cap)
    Bp = _round_up(B, tb_eff)
    grid = Bp // tb_eff

    # pre-concat + transpose in one XLA pass: (B,32)|(B,32) -> (64, Bp)
    x = jnp.concatenate([embeds_u.T, embeds_v.T], axis=0).astype(compute_dtype)
    if Bp != B:
        x = jnp.pad(x, ((0, 0), (0, Bp - B)))

    out = pl.pallas_call(
        graphrec_kernel,
        out_shape=jax.ShapeDtypeStruct((1, Bp), jnp.float32),
        grid=(grid,),
        in_specs=[
            pl.BlockSpec((CAT, tb_eff), lambda i: (0, i)),
            pl.BlockSpec(w_slab.shape, lambda i: (0, 0)),   # resident, DMA'd once
            pl.BlockSpec(b_slab.shape, lambda i: (0, 0)),   # resident, DMA'd once
        ],
        out_specs=pl.BlockSpec((1, tb_eff), lambda i: (0, i)),
        compiler_params=pltpu.CompilerParams(
            dimension_semantics=("parallel",)),             # megacore on v7x
    )(x, w_slab, b_slab)
    return out[0, :B]  # scores.squeeze()


# ----------------------------------------------------------------------------
# Deterministic parameter / input construction (PyTorch-style init, no files).
# ----------------------------------------------------------------------------
def init_linear(key, fan_in, fan_out):
    k1, k2 = jax.random.split(key)
    bound = 1.0 / jnp.sqrt(jnp.float32(fan_in))
    w = jax.random.uniform(k1, (fan_in, fan_out), jnp.float32, -bound, bound)
    b = jax.random.uniform(k2, (1, fan_out), jnp.float32, -bound, bound)
    return w, b


def init_bn(features):
    # PyTorch BatchNorm1d defaults: gamma=1, beta=0, running_mean=0, running_var=1
    return jnp.stack([jnp.ones((features,), jnp.float32),
                      jnp.zeros((features,), jnp.float32),
                      jnp.zeros((features,), jnp.float32),
                      jnp.ones((features,), jnp.float32)], axis=0)


def init_params(key):
    ks = jax.random.split(key, 7)
    p = {}
    p["w_ur1"], p["b_ur1"] = init_linear(ks[0], EMBED_DIM, EMBED_DIM)
    p["w_ur2"], p["b_ur2"] = init_linear(ks[1], EMBED_DIM, EMBED_DIM)
    p["w_vr1"], p["b_vr1"] = init_linear(ks[2], EMBED_DIM, EMBED_DIM)
    p["w_vr2"], p["b_vr2"] = init_linear(ks[3], EMBED_DIM, EMBED_DIM)
    p["w_uv1"], p["b_uv1"] = init_linear(ks[4], EMBED_DIM * 2, EMBED_DIM)
    p["w_uv2"], p["b_uv2"] = init_linear(ks[5], EMBED_DIM, HID2)
    p["w_uv3"], p["b_uv3"] = init_linear(ks[6], HID2, 1)
    p["bn1"] = init_bn(EMBED_DIM)
    p["bn2"] = init_bn(EMBED_DIM)
    p["bn3"] = init_bn(EMBED_DIM)
    p["bn4"] = init_bn(HID2)
    return p


def reference_forward(eu, ev, p):
    """Pure-JAX reference (same eval-mode semantics, unfolded BN) for sanity check."""
    def bn(x, q):
        return q[0] * (x - q[2]) * jax.lax.rsqrt(q[3] + BN_EPS) + q[1]
    xu = jnp.maximum(bn(eu @ p["w_ur1"] + p["b_ur1"], p["bn1"]), 0.0)
    xu = xu @ p["w_ur2"] + p["b_ur2"]
    xv = jnp.maximum(bn(ev @ p["w_vr1"] + p["b_vr1"], p["bn2"]), 0.0)
    xv = xv @ p["w_vr2"] + p["b_vr2"]
    x = jnp.concatenate([xu, xv], axis=1) @ p["w_uv1"] + p["b_uv1"]
    x = jnp.maximum(bn(x, p["bn3"]), 0.0)
    x = jnp.maximum(bn(x @ p["w_uv2"] + p["b_uv2"], p["bn4"]), 0.0)
    return (x @ p["w_uv3"] + p["b_uv3"])[:, 0]


if __name__ == "__main__":
    key = jax.random.PRNGKey(0)
    k_par, k_tu, k_tv, k_iu, k_iv = jax.random.split(key, 5)

    params = init_params(k_par)

    # Synthetic "encoders": embedding tables + node-id lookups (glue in JAX).
    num_users, num_items, batch = 50, 40, 64
    user_table = jax.random.normal(k_tu, (num_users, EMBED_DIM), jnp.float32)
    item_table = jax.random.normal(k_tv, (num_items, EMBED_DIM), jnp.float32)
    nodes_u = jax.random.randint(k_iu, (batch,), 0, num_users)
    nodes_v = jax.random.randint(k_iv, (batch,), 0, num_items)
    embeds_u = user_table[nodes_u]   # (B, 32)  ~ enc_u(nodes_u)
    embeds_v = item_table[nodes_v]   # (B, 32)  ~ enc_v_history(nodes_v)

    ref = reference_forward(embeds_u, embeds_v, params)

    # full-precision path (tight check)
    scores_f32 = graphrec_forward(embeds_u, embeds_v, params,
                                  compute_dtype=jnp.float32)
    scores_f32 = jax.block_until_ready(scores_f32)
    assert scores_f32.shape == (batch,)
    assert jnp.allclose(scores_f32, ref, atol=2e-3, rtol=2e-3), (scores_f32, ref)

    # bf16-streaming path (halves HBM traffic; f32 accumulation on the MXU)
    scores_bf16 = graphrec_forward(embeds_u, embeds_v, params,
                                   compute_dtype=jnp.bfloat16)
    scores_bf16 = jax.block_until_ready(scores_bf16)
    assert scores_bf16.shape == (batch,)
    assert jnp.allclose(scores_bf16, ref, atol=5e-2, rtol=5e-2), (scores_bf16, ref)

    print("KERNEL_OK")
</pallas_src>

<mosaic_0001>
module attributes {stable_mosaic.version = 11 : i64} {
  func.func @graphrec_kernel(%arg0: i32, %arg1: memref<64x128xf32, #tpu.memory_space<vmem>>, %arg2: memref<64x640xf32, #tpu.memory_space<vmem>>, %arg3: memref<64x8xf32, #tpu.memory_space<vmem>>, %arg4: memref<1x128xf32, #tpu.memory_space<vmem>>) attributes {dimension_semantics = [#tpu.dimension_semantics<parallel>], iteration_bounds = array<i64: 1>, scalar_prefetch = 0 : i64, scratch_operands = 0 : i64, tpu.core_type = #tpu.core_type<tc>, window_params = [{transform_indices = @transform_0, window_bounds = array<i64: 64, 128>}, {pipeline_mode = #tpu.pipeline_mode<synchronous>, transform_indices = @transform_1, window_bounds = array<i64: 64, 640>}, {pipeline_mode = #tpu.pipeline_mode<synchronous>, transform_indices = @transform_2, window_bounds = array<i64: 64, 8>}, {transform_indices = @transform_3, window_bounds = array<i64: 1, 128>}]} {
    %c0 = arith.constant 0 : index
    %c0_0 = arith.constant 0 : index
    %0 = vector.load %arg2[%c0, %c0_0] : memref<64x640xf32, #tpu.memory_space<vmem>>, vector<64x64xf32>
    %c0_1 = arith.constant 0 : index
    %c128 = arith.constant 128 : index
    %1 = vector.load %arg2[%c0_1, %c128] : memref<64x640xf32, #tpu.memory_space<vmem>>, vector<64x64xf32>
    %c0_2 = arith.constant 0 : index
    %c256 = arith.constant 256 : index
    %2 = vector.load %arg2[%c0_2, %c256] : memref<64x640xf32, #tpu.memory_space<vmem>>, vector<32x64xf32>
    %c0_3 = arith.constant 0 : index
    %c384 = arith.constant 384 : index
    %3 = vector.load %arg2[%c0_3, %c384] : memref<64x640xf32, #tpu.memory_space<vmem>>, vector<16x32xf32>
    %c0_4 = arith.constant 0 : index
    %c512 = arith.constant 512 : index
    %4 = vector.load %arg2[%c0_4, %c512] : memref<64x640xf32, #tpu.memory_space<vmem>>, vector<16x16xf32>
    %c0_5 = arith.constant 0 : index
    %c0_6 = arith.constant 0 : index
    %5 = vector.load %arg3[%c0_5, %c0_6] : memref<64x8xf32, #tpu.memory_space<vmem>>, vector<64x1xf32>
    %c0_7 = arith.constant 0 : index
    %c1 = arith.constant 1 : index
    %6 = vector.load %arg3[%c0_7, %c1] : memref<64x8xf32, #tpu.memory_space<vmem>>, vector<64x1xf32>
    %c0_8 = arith.constant 0 : index
    %c2 = arith.constant 2 : index
    %7 = vector.load %arg3[%c0_8, %c2] : memref<64x8xf32, #tpu.memory_space<vmem>>, vector<32x1xf32>
    %c0_9 = arith.constant 0 : index
    %c3 = arith.constant 3 : index
    %8 = vector.load %arg3[%c0_9, %c3] : memref<64x8xf32, #tpu.memory_space<vmem>>, vector<16x1xf32>
    %c0_10 = arith.constant 0 : index
    %c4 = arith.constant 4 : index
    %9 = vector.load %arg3[%c0_10, %c4] : memref<64x8xf32, #tpu.memory_space<vmem>>, vector<1x1xf32>
    %c0_11 = arith.constant 0 : index
    %c0_12 = arith.constant 0 : index
    %10 = vector.load %arg1[%c0_11, %c0_12] : memref<64x128xf32, #tpu.memory_space<vmem>>, vector<64x128xf32>
    %cst = arith.constant dense<0.000000e+00> : vector<64x128xf32>
    %11 = tpu.matmul %0, %10, %cst {dimension_numbers = #tpu.dot_dimension_numbers<[1], [0], [0], [1], [0, 0, 1, 1], [], []>} : vector<64x64xf32>, vector<64x128xf32>, vector<64x128xf32> -> vector<64x128xf32>
    %12 = vector.broadcast %5 : vector<64x1xf32> to vector<64x128xf32>
    %13 = arith.addf %11, %12 : vector<64x128xf32>
    %cst_13 = arith.constant 0.000000e+00 : f32
    %14 = vector.broadcast %cst_13 : f32 to vector<64x128xf32>
    %15 = arith.maximumf %13, %14 : vector<64x128xf32>
    %cst_14 = arith.constant dense<0.000000e+00> : vector<64x128xf32>
    %16 = tpu.matmul %1, %15, %cst_14 {dimension_numbers = #tpu.dot_dimension_numbers<[1], [0], [0], [1], [0, 0, 1, 1], [], []>} : vector<64x64xf32>, vector<64x128xf32>, vector<64x128xf32> -> vector<64x128xf32>
    %17 = vector.broadcast %6 : vector<64x1xf32> to vector<64x128xf32>
    %18 = arith.addf %16, %17 : vector<64x128xf32>
    %cst_15 = arith.constant dense<0.000000e+00> : vector<32x128xf32>
    %19 = tpu.matmul %2, %18, %cst_15 {dimension_numbers = #tpu.dot_dimension_numbers<[1], [0], [0], [1], [0, 0, 1, 1], [], []>} : vector<32x64xf32>, vector<64x128xf32>, vector<32x128xf32> -> vector<32x128xf32>
    %20 = vector.broadcast %7 : vector<32x1xf32> to vector<32x128xf32>
    %21 = arith.addf %19, %20 : vector<32x128xf32>
    %cst_16 = arith.constant 0.000000e+00 : f32
    %22 = vector.broadcast %cst_16 : f32 to vector<32x128xf32>
    %23 = arith.maximumf %21, %22 : vector<32x128xf32>
    %cst_17 = arith.constant dense<0.000000e+00> : vector<16x128xf32>
    %24 = tpu.matmul %3, %23, %cst_17 {dimension_numbers = #tpu.dot_dimension_numbers<[1], [0], [0], [1], [0, 0, 1, 1], [], []>} : vector<16x32xf32>, vector<32x128xf32>, vector<16x128xf32> -> vector<16x128xf32>
    %25 = vector.broadcast %8 : vector<16x1xf32> to vector<16x128xf32>
    %26 = arith.addf %24, %25 : vector<16x128xf32>
    %cst_18 = arith.constant 0.000000e+00 : f32
    %27 = vector.broadcast %cst_18 : f32 to vector<16x128xf32>
    %28 = arith.maximumf %26, %27 : vector<16x128xf32>
    %cst_19 = arith.constant dense<0.000000e+00> : vector<16x128xf32>
    %29 = tpu.matmul %4, %28, %cst_19 {dimension_numbers = #tpu.dot_dimension_numbers<[1], [0], [0], [1], [0, 0, 1, 1], [], []>} : vector<16x16xf32>, vector<16x128xf32>, vector<16x128xf32> -> vector<16x128xf32>
    %30 = vector.extract_strided_slice %29 {offsets = [0, 0], sizes = [1, 128], strides = [1, 1]} : vector<16x128xf32> to vector<1x128xf32>
    %31 = vector.broadcast %9 : vector<1x1xf32> to vector<1x128xf32>
    %32 = arith.addf %30, %31 : vector<1x128xf32>
    %c0_20 = arith.constant 0 : index
    %c0_21 = arith.constant 0 : index
    %33 = vector.load %arg4[%c0_20, %c0_21] : memref<1x128xf32, #tpu.memory_space<vmem>>, vector<1x128xf32>
    tpu.vector_store %arg4[%c0_20, %c0_21], %32 {strides = array<i32>} : memref<1x128xf32, #tpu.memory_space<vmem>>, vector<1x128xf32>,
    return
  }
  func.func @transform_0(%arg0: i32) -> (i32, i32) {
    %c0_i32 = arith.constant 0 : i32
    %c0_i32_0 = arith.constant 0 : i32
    return %c0_i32, %arg0 : i32, i32
  }
  func.func @transform_1(%arg0: i32) -> (i32, i32) {
    %c0_i32 = arith.constant 0 : i32
    %c0_i32_0 = arith.constant 0 : i32
    %c0_i32_1 = arith.constant 0 : i32
    return %c0_i32, %c0_i32_0 : i32, i32
  }
  func.func @transform_2(%arg0: i32) -> (i32, i32) {
    %c0_i32 = arith.constant 0 : i32
    %c0_i32_0 = arith.constant 0 : i32
    %c0_i32_1 = arith.constant 0 : i32
    return %c0_i32, %c0_i32_0 : i32, i32
  }
  func.func @transform_3(%arg0: i32) -> (i32, i32) {
    %c0_i32 = arith.constant 0 : i32
    %c0_i32_0 = arith.constant 0 : i32
    return %c0_i32, %arg0 : i32, i32
  }
}

</mosaic_0001>

<bundles_post_ra>
// kernel: tpu_custom_call.1
= control target key start
LH: loop header
LB: loop body
LE: loop exit
PB: predicated region body
PF: predicated region fallthrough
CT: control target
= control target key end

     0   :  { %8 = vsyncpa [#allocation3], 0  ;;  %s1172_s0 = inlined_call_operand.vmem [shape: f32[64,128], index: 0, kind: input, shape index: {}]   ;;  %s1173_s1 = inlined_call_operand.hbm [shape: f32[64,640], index: 1, kind: input, shape index: {}]   ;;  %s1174_s2 = inlined_call_operand.vmem [shape: f32[64,8], index: 2, kind: input, shape index: {}]   ;;  %s1175_s3 = inlined_call_operand.hbm [shape: f32[1,128], index: 3, kind: output, shape index: {}]  }
   0x1   :  { %9 = vsyncpa [#allocation4], 0  ;;  %s1022_s12 = smov [#allocation2]   ;;  %s974_s16 = scalar_lea.hbm %s1173_s1, 5120 }
   0x2   :  { %s17_s13 = sshll.u32 %s1022_s12, 4  ;;  %p975_p0 = scmp.ne.s32.totalorder %s1173_s1, %s974_s16  ;;  %s18_s13 = int_to_ptr.vmem [resolvable:$true] %s17_s13 }
   0x3   :  { %p978_p1 = scmp.lt.u32.totalorder %s974_s16, %s1173_s1 }
   0x5   :  { %p980_p2 = pnand %p978_p1, %p975_p0 }
   0x7   :  { %983 = shalt.err (!%p980_p2)
}
   0x8   :  { %s984_s21 = scalar_lea.vmem %s18_s13, 5120  ;;  %p989_p4 = scmp.lt.s32.totalorder %s18_s13, %s18_s13 }
   0x9   :  { %p985_p3 = scmp.ne.s32.totalorder %s18_s13, %s984_s21  ;;  %p990_p5 = scmp.lt.s32.totalorder %s984_s21, %s984_s21 }
   0xb   :  { %p991_p6 = por %p990_p5, %p989_p4 }
   0xd   :  { %p992_p7 = pnand %p991_p6, %p985_p3 }
   0xf   :  { %995 = shalt.err (!%p992_p7)
}
  0x10   :  { %s1023_s22 = smov 640   ;;  %s1024_s23 = smov 40  }
  0x11   :  { %23 = dma.hbm_to_vmem [thread:$0]  %s1173_s1, 5120, %s18_s13, [#allocation3], %s1023_s22, %s1023_s22, %s1024_s23  }
  0x12   :  { %1018 = dma.done.wait [#allocation3], 5120  }
  0x13   :  { %1019 = vsyncadd [#allocation3], 4294962176  ;;  %v1025_v0 = vmov 0   ;;  %v62_v1 = vld [vmem:[%s1172_s0] sm:$0xff]  ;;  %v63_v2 = vld [vmem:[%s1172_s0 + $0x8] sm:$0xff]  ;;  %vm110_vm0 = vcmask 523264  }
  0x14   :  { %964 = vset.pattern.permute.xlu0 %v1025_v0  ;;  %965 = vset.pattern.permute.xlu1 %v1025_v0  ;;  %v64_v3 = vld [vmem:[%s1172_s0 + $0x10] sm:$0xff]  ;;  %v895_v4 = vpack.c.bf16 %v63_v2, %v62_v1  ;;  %v65_v5 = vld [vmem:[%s1172_s0 + $0x18] sm:$0xff]  ;;  %v66_v7 = vld [vmem:[%s1172_s0 + $0x20] sm:$0xff]  ;;  %v1026_v30 = vmov 1   ;;  %vm534_vm1 = vcmask 261120   ;;  %vm618_vm2 = vcmask 130048  }
  0x15   :  { %v899_v6 = vpack.c.bf16 %v65_v5, %v64_v3  ;;  %v67_v8 = vld [vmem:[%s1172_s0 + $0x28] sm:$0xff]  ;;  %v29_v9 = vld [vmem:[#allocation2] sm:$0xff]  ;;  %v1090_v12 = vld [vmem:[%s1174_s2 + $0x10] sm:$0xff] }
  0x16   :  { %896 = vmatprep.subr.bf16.mxu0 %v895_v4  ;;  %815 = vmatprep.mubr.msk.f32.mxu0 %vm110_vm0, %v29_v9  ;;  %v903_v10 = vpack.c.bf16 %v67_v8, %v66_v7  ;;  %v1085_v11 = vld [vmem:[%s1174_s2] sm:$0xff]  ;;  %v68_v13 = vld [vmem:[%s1172_s0 + $0x30] sm:$0xff]  ;;  %v69_v14 = vld [vmem:[%s1172_s0 + $0x38] sm:$0xff] }
  0x17   :  { %898 = vmatpush3.bf16.msra.mxu0 %v895_v4  ;;  %72 = vperm.xlu0 %964, %v1085_v11   ;;  %v1103_v15 = vld [vmem:[%s1174_s2 + $0x8] sm:$0xff]  ;;  %v1108_v16 = vld [vmem:[%s1174_s2 + $0x18] sm:$0xff]  ;;  %v907_v17 = vpack.c.bf16 %v69_v14, %v68_v13  ;;  %v57_v18 = vld [vmem:[%s1174_s2 + $0x20] sm:$0xff]  ;;  %v1027_v13 = vmov 2  }
  0x18   :  { %900 = vmatprep.subr.bf16.mxu0 %v899_v6  ;;  %82 = vperm.xlu1 %965, %v1090_v12   ;;  %v58_v19 = vld [vmem:[%s1174_s2 + $0x28] sm:$0xff]  ;;  %v59_v20 = vld [vmem:[%s1174_s2 + $0x30] sm:$0xff]  ;;  %v60_v21 = vld [vmem:[%s1174_s2 + $0x38] sm:$0xff] }
  0x19   :  { %v30_v22 = vld [vmem:[#allocation2 + $0x28] sm:$0xff]  ;;  %v31_v23 = vld [vmem:[#allocation2 + $0x50] sm:$0xff]  ;;  %v32_v24 = vld [vmem:[#allocation2 + $0x78] sm:$0xff] }
  0x1a   :  { %v33_v25 = vld [vmem:[#allocation2 + $0xa0] sm:$0xff]  ;;  %v34_v26 = vld [vmem:[#allocation2 + $0xc8] sm:$0xff]  ;;  %v35_v27 = vld [vmem:[#allocation2 + $0xf0] sm:$0xff] }
  0x1b   :  { %902 = vmatpush3.bf16.msra.mxu0 %v899_v6  ;;  %77 = vperm.xlu0 %964, %v1103_v15   ;;  %v36_v28 = vld [vmem:[#allocation2 + $0x118] sm:$0xff]  ;;  %v37_v29 = vld [vmem:[#allocation2 + $0x8] sm:$0xff]  ;;  %v38_v3 = vld [vmem:[#allocation2 + $0x30] sm:$0xff] }
  0x1c   :  { %904 = vmatprep.subr.bf16.mxu0 %v903_v10  ;;  %87 = vperm.xlu1 %965, %v1108_v16   ;;  %v39_v4 = vld [vmem:[#allocation2 + $0x58] sm:$0xff]  ;;  %v40_v5 = vld [vmem:[#allocation2 + $0x80] sm:$0xff]  ;;  %v41_v6 = vld [vmem:[#allocation2 + $0xa8] sm:$0xff] }
  0x1d   :  { %843 = vmatprep.mubr.msk.f32.mxu1 %vm110_vm0, %v37_v29  ;;  %v42_v7 = vld [vmem:[#allocation2 + $0xd0] sm:$0xff]  ;;  %v43_v8 = vld [vmem:[#allocation2 + $0xf8] sm:$0xff]  ;;  %v44_v9 = vld [vmem:[#allocation2 + $0x120] sm:$0xff] }
  0x1f   :  { %906 = vmatpush3.bf16.msra.mxu0 %v903_v10  ;;  %92 = vperm.xlu0 %964, %v57_v18   ;;  %v45_v10 = vld [vmem:[#allocation2 + $0x10] sm:$0xff] }
  0x20   :  { %908 = vmatprep.subr.bf16.mxu0 %v907_v17  ;;  %97 = vperm.xlu1 %965, %v58_v19  }
  0x23   :  { %910 = vmatpush3.bf16.msra.mxu0 %v907_v17  ;;  %102 = vperm.xlu0 %964, %v59_v20  }
  0x24   :  { %107 = vperm.xlu1 %965, %v60_v21  }
  0x26   :  { %816 = vmatmul.mubr.msk.f32.vlgmr.msra.gmra.mrb[0].mxu0 %vm110_vm0, %v30_v22 }
  0x27   :  { %818 = vmatprep.mubr.msk.f32.mxu0 %vm110_vm0, %v31_v23  ;;  %966 = vset.pattern.permute.xlu0 %v1026_v30 }
  0x28   :  { %967 = vset.pattern.permute.xlu1 %v1026_v30  ;;  %249 = vperm.xlu0 %966, %v1085_v11  }
  0x29   :  { %253 = vperm.xlu1 %967, %v1103_v15  }
  0x2a   :  { %819 = vmatmul.mubr.msk.f32.gmra.mrb[2].mxu0 %vm110_vm0, %v32_v24 }
  0x2b   :  { %821 = vmatprep.mubr.msk.f32.mxu0 %vm110_vm0, %v33_v25 }
  0x2c   :  { %261 = vperm.xlu0 %966, %v1108_v16  }
  0x2d   :  { %257 = vperm.xlu1 %967, %v1090_v12  }
  0x2e   :  { %822 = vmatmul.mubr.msk.f32.gmra.mrb[4].mxu0 %vm110_vm0, %v34_v26 }
  0x2f   :  { %824 = vmatprep.mubr.msk.f32.mxu0 %vm110_vm0, %v35_v27 }
  0x30   :  { %269 = vperm.xlu0 %966, %v58_v19  }
  0x31   :  { %265 = vperm.xlu1 %967, %v57_v18  }
  0x32   :  { %825 = vmatmul.mubr.msk.f32.gmra.mrb[6].mxu0 %vm110_vm0, %v36_v28 }
  0x33   :  { %871 = vmatprep.mubr.msk.f32.mxu0 %vm110_vm0, %v45_v10 }
  0x34   :  { %277 = vperm.xlu0 %966, %v60_v21  }
  0x35   :  { %273 = vperm.xlu1 %967, %v59_v20  }
  0x38   :  { %969 = vset.pattern.permute.xlu0 %v1027_v13 }
  0x39   :  { %968 = vset.pattern.permute.xlu1 %v1027_v13  ;;  %414 = vperm.xlu0 %969, %v1103_v15  }
  0x3a   :  { %410 = vperm.xlu1 %968, %v1085_v11  }
  0x3e   :  { %418 = vperm.xlu1 %968, %v1090_v12  }
  0x42   :  { %422 = vperm.xlu1 %968, %v1108_v16  }
  0x96   :  { %v73_v31 = vpop.permute.xlu0 %72 }
  0x97   :  { %v83_v32 = vpop.permute.xlu1 %82 }
  0x9a   :  { %v78_v33 = vpop.permute.xlu0 %77 }
  0x9b   :  { %v88_v34 = vpop.permute.xlu1 %87 }
  0x9e   :  { %v93_v47 = vpop.permute.xlu0 %92 }
  0x9f   :  { %v98_v44 = vpop.permute.xlu1 %97 }
  0xa2   :  { %v103_v59 = vpop.permute.xlu0 %102 }
  0xa3   :  { %v108_v56 = vpop.permute.xlu1 %107 }
  0xa7   :  { %v250_v14 = vpop.permute.xlu0 %249 }
  0xa8   :  { %v254_v17 = vpop.permute.xlu1 %253 }
  0xab   :  { %v262_v18 = vpop.permute.xlu0 %261 }
  0xac   :  { %v258_v20 = vpop.permute.xlu1 %257 }
  0xaf   :  { %v270_v28 = vpop.permute.xlu0 %269 }
  0xb0   :  { %v266_v30 = vpop.permute.xlu1 %265 }
  0xf9   :  { %v817_v35 = vpop.f32.mrb[0].mxu0 }
  0xfa   :  { %v207_v36 = vadd.f32 %v817_v35, %v78_v33  ;;  %v201_v37 = vpop.f32.mrb[1].mxu0 }
  0xfb   :  { %v202_v38 = vadd.f32 %v201_v37, %v73_v31  ;;  %v274_v37 = vpop.permute.xlu1 %273 }
  0xfc   :  { %v241_v39 = vmax.f32 %v207_v36, 0.0 }
  0xfd   :  { %v240_v40 = vmax.f32 %v202_v38, 0.0  ;;  %v820_v41 = vpop.f32.mrb[2].mxu0 }
  0xfe   :  { %v217_v42 = vadd.f32 %v820_v41, %v88_v34  ;;  %v211_v43 = vpop.f32.mrb[3].mxu0  ;;  %v278_v34 = vpop.permute.xlu0 %277 }
  0xff   :  { %v212_v45 = vadd.f32 %v211_v43, %v83_v32  ;;  %v911_v46 = vpack.c.bf16 %v241_v39, %v240_v40  ;;  %v47_v43 = vld [vmem:[#allocation2 + $0x60] sm:$0xff] }
 0x100   :  { %v243_v48 = vmax.f32 %v217_v42, 0.0  ;;  %v46_v42 = vld [vmem:[#allocation2 + $0x38] sm:$0xff] }
 0x101   :  { %v242_v49 = vmax.f32 %v212_v45, 0.0  ;;  %v823_v50 = vpop.f32.mrb[4].mxu0  ;;  %912 = vmatprep.subr.bf16.mxu1 %v911_v46  ;;  %v49_v45 = vld [vmem:[#allocation2 + $0x18] sm:$0xff] }
 0x102   :  { %v227_v51 = vadd.f32 %v823_v50, %v98_v44  ;;  %v221_v52 = vpop.f32.mrb[5].mxu0  ;;  %914 = vmatpush3.bf16.msra.mxu1 %v911_v46  ;;  %v48_v44 = vld [vmem:[#allocation2 + $0x88] sm:$0xff]  ;;  %v1028_v46 = vmov 3  }
 0x103   :  { %v915_v53 = vpack.c.bf16 %v243_v48, %v242_v49  ;;  %v222_v54 = vadd.f32 %v221_v52, %v93_v47  ;;  %971 = vset.pattern.permute.xlu1 %v1028_v46  ;;  %970 = vset.pattern.permute.xlu0 %v1028_v46  ;;  %v411_v47 = vpop.permute.xlu1 %410  ;;  %v415_v49 = vpop.permute.xlu0 %414 }
 0x104   :  { %v245_v55 = vmax.f32 %v227_v51, 0.0  ;;  %531 = vperm.xlu1 %971, %v1103_v15   ;;  %527 = vperm.xlu0 %970, %v1085_v11   ;;  %v50_v15 = vld [vmem:[#allocation2 + $0x40] sm:$0xff] }
 0x105   :  { %v244_v57 = vmax.f32 %v222_v54, 0.0  ;;  %v826_v58 = vpop.f32.mrb[6].mxu0  ;;  %916 = vmatprep.subr.bf16.mxu1 %v915_v53 }
 0x106   :  { %v237_v60 = vadd.f32 %v826_v58, %v108_v56  ;;  %v231_v61 = vpop.f32.mrb[7].mxu0  ;;  %918 = vmatpush3.bf16.msra.mxu1 %v915_v53 }
 0x107   :  { %v919_v62 = vpack.c.bf16 %v245_v55, %v244_v57  ;;  %v232_v63 = vadd.f32 %v231_v61, %v103_v59  ;;  %v419_v48 = vpop.permute.xlu1 %418 }
 0x108   :  { %v247_v0 = vmax.f32 %v237_v60, 0.0 }
 0x109   :  { %v246_v1 = vmax.f32 %v232_v63, 0.0  ;;  %920 = vmatprep.subr.bf16.mxu1 %v919_v62 }
 0x10a   :  { %922 = vmatpush3.bf16.msra.mxu1 %v919_v62 }
 0x10b   :  { %v923_v2 = vpack.c.bf16 %v247_v0, %v246_v1  ;;  %v423_v55 = vpop.permute.xlu1 %422  ;;  %v51_v0 = vld [vmem:[#allocation2 + $0x20] sm:$0xff] }
 0x10c   :  { %v61_v1 = vld [vmem:[%s1174_s2] sm:$0x1]  ;;  %s1030_s2 = smov [#allocation5]  }
 0x10d   :  { %924 = vmatprep.subr.bf16.mxu1 %v923_v2  ;;  %s712_s4 = sshll.u32 %s1030_s2, 4  ;;  %s713_s4 = int_to_ptr.vmem [resolvable:$true] %s712_s4 }
 0x10e   :  { %926 = vmatpush3.bf16.msra.mxu1 %v923_v2  ;;  %v1029_v2 = vmov 4   ;;  %s996_s1 = scalar_lea.vmem %s713_s4, 16  ;;  %s1000_s5 = scalar_lea.vmem %s713_s4, 32 }
 0x10f   :  { %972 = vset.pattern.permute.xlu1 %v1029_v2  ;;  %973 = vset.pattern.permute.xlu0 %v1029_v2  ;;  %p997_p8 = scmp.ne.s32.totalorder %s713_s4, %s996_s1  ;;  %p1001_p9 = scmp.lt.s32.totalorder %s713_s4, %s713_s4 }
 0x110   :  { %701 = vperm.xlu1 %972, %v61_v1   ;;  %p1002_p10 = scmp.lt.s32.totalorder %s1000_s5, %s996_s1 }
 0x111   :  { %844 = vmatmul.mubr.msk.f32.vlgmr.msra.gmra.mrb[0].mxu1 %vm110_vm0, %v38_v3 }
 0x112   :  { %846 = vmatprep.mubr.msk.f32.mxu1 %vm110_vm0, %v39_v4  ;;  %p1003_p11 = por %p1002_p10, %p1001_p9 }
 0x114   :  { %p1004_p12 = pnand %p1003_p11, %p997_p8 }
 0x115   :  { %847 = vmatmul.mubr.msk.f32.gmra.mrb[2].mxu1 %vm110_vm0, %v40_v5 }
 0x116   :  { %849 = vmatprep.mubr.msk.f32.mxu1 %vm110_vm0, %v41_v6 }
 0x119   :  { %850 = vmatmul.mubr.msk.f32.gmra.mrb[4].mxu1 %vm110_vm0, %v42_v7 }
 0x11a   :  { %852 = vmatprep.mubr.msk.f32.mxu1 %vm110_vm0, %v43_v8 }
 0x11d   :  { %853 = vmatmul.mubr.msk.f32.gmra.mrb[6].mxu1 %vm110_vm0, %v44_v9 }
 0x11e   :  { %885 = vmatprep.mubr.msk.f32.mxu1 %vm534_vm1, %v49_v45 }
 0x183   :  { %v532_v3 = vpop.permute.xlu1 %531  ;;  %v528_v4 = vpop.permute.xlu0 %527 }
 0x1e4   :  { %v845_v19 = vpop.f32.mrb[0].mxu1 }
 0x1e5   :  { %v376_v21 = vadd.f32 %v845_v19, %v254_v17  ;;  %v370_v22 = vpop.f32.mrb[1].mxu1  ;;  %v702_v17 = vpop.permute.xlu1 %701 }
 0x1e6   :  { %v371_v23 = vadd.f32 %v370_v22, %v250_v14  ;;  %v52_v14 = vld [vmem:[#allocation2 + $0x48] sm:$0xff] }
 0x1e8   :  { %v927_v24 = vpack.c.bf16 %v376_v21, %v371_v23  ;;  %v848_v25 = vpop.f32.mrb[2].mxu1 }
 0x1e9   :  { %v386_v26 = vadd.f32 %v848_v25, %v262_v18  ;;  %v380_v27 = vpop.f32.mrb[3].mxu1 }
 0x1ea   :  { %v381_v29 = vadd.f32 %v380_v27, %v258_v20  ;;  %928 = vmatprep.subr.bf16.mxu0 %v927_v24 }
 0x1eb   :  { %930 = vmatpush3.bf16.msra.mxu0 %v927_v24 }
 0x1ec   :  { %v931_v12 = vpack.c.bf16 %v386_v26, %v381_v29  ;;  %v851_v31 = vpop.f32.mrb[4].mxu1 }
 0x1ed   :  { %v396_v16 = vadd.f32 %v851_v31, %v270_v28  ;;  %v390_v32 = vpop.f32.mrb[5].mxu1 }
 0x1ee   :  { %v391_v33 = vadd.f32 %v390_v32, %v266_v30  ;;  %932 = vmatprep.subr.bf16.mxu0 %v931_v12 }
 0x1ef   :  { %934 = vmatpush3.bf16.msra.mxu0 %v931_v12 }
 0x1f0   :  { %v935_v35 = vpack.c.bf16 %v396_v16, %v391_v33  ;;  %v854_v36 = vpop.f32.mrb[6].mxu1 }
 0x1f1   :  { %v406_v38 = vadd.f32 %v854_v36, %v278_v34  ;;  %v400_v39 = vpop.f32.mrb[7].mxu1 }
 0x1f2   :  { %v401_v40 = vadd.f32 %v400_v39, %v274_v37  ;;  %936 = vmatprep.subr.bf16.mxu0 %v935_v35 }
 0x1f3   :  { %938 = vmatpush3.bf16.msra.mxu0 %v935_v35 }
 0x1f4   :  { %v939_v41 = vpack.c.bf16 %v406_v38, %v401_v40 }
 0x1f6   :  { %940 = vmatprep.subr.bf16.mxu0 %v939_v41 }
 0x1f7   :  { %942 = vmatpush3.bf16.msra.mxu0 %v939_v41 }
 0x1fa   :  { %872 = vmatmul.mubr.msk.f32.vlgmr.msra.gmra.mrb[8].mxu0 %vm110_vm0, %v46_v42 }
 0x1fb   :  { %874 = vmatprep.mubr.msk.f32.mxu0 %vm110_vm0, %v47_v43 }
 0x1fe   :  { %875 = vmatmul.mubr.msk.f32.gmra.mrb[10].mxu0 %vm110_vm0, %v48_v44 }
 0x2cd   :  { %v873_v50 = vpop.f32.mrb[8].mxu0 }
 0x2ce   :  { %v509_v51 = vadd.f32 %v873_v50, %v415_v49  ;;  %v503_v52 = vpop.f32.mrb[9].mxu0 }
 0x2cf   :  { %v504_v53 = vadd.f32 %v503_v52, %v411_v47 }
 0x2d0   :  { %v523_v54 = vmax.f32 %v509_v51, 0.0 }
 0x2d1   :  { %v522_v56 = vmax.f32 %v504_v53, 0.0  ;;  %v876_v57 = vpop.f32.mrb[10].mxu0 }
 0x2d2   :  { %v519_v58 = vadd.f32 %v876_v57, %v423_v55  ;;  %v513_v59 = vpop.f32.mrb[11].mxu0 }
 0x2d3   :  { %v943_v60 = vpack.c.bf16 %v523_v54, %v522_v56  ;;  %v514_v61 = vadd.f32 %v513_v59, %v419_v48 }
 0x2d4   :  { %v525_v62 = vmax.f32 %v519_v58, 0.0 }
 0x2d5   :  { %v524_v63 = vmax.f32 %v514_v61, 0.0  ;;  %944 = vmatprep.subr.bf16.mxu1 %v943_v60 }
 0x2d6   :  { %946 = vmatpush3.bf16.msra.mxu1 %v943_v60 }
 0x2d7   :  { %v947_v11 = vpack.c.bf16 %v525_v62, %v524_v63 }
 0x2d9   :  { %948 = vmatprep.subr.bf16.mxu1 %v947_v11 }
 0x2da   :  { %950 = vmatpush3.bf16.msra.mxu1 %v947_v11 }
 0x2dd   :  { %886 = vmatmul.mubr.msk.f32.vlgmr.msra.gmra.mrb[8].mxu1 %vm534_vm1, %v50_v15 }
 0x2de   :  { %892 = vmatprep.mubr.msk.f32.mxu1 %vm618_vm2, %v51_v0 }
 0x3b0   :  { %v887_v5 = vpop.f32.mrb[8].mxu1 }
 0x3b1   :  { %v613_v6 = vadd.f32 %v887_v5, %v532_v3  ;;  %v607_v7 = vpop.f32.mrb[9].mxu1 }
 0x3b2   :  { %v608_v8 = vadd.f32 %v607_v7, %v528_v4 }
 0x3b3   :  { %v617_v9 = vmax.f32 %v613_v6, 0.0 }
 0x3b4   :  { %v616_v10 = vmax.f32 %v608_v8, 0.0 }
 0x3b6   :  { %v951_v13 = vpack.c.bf16 %v617_v9, %v616_v10 }
 0x3b8   :  { %952 = vmatprep.subr.bf16.mxu1 %v951_v13 }
 0x3b9   :  { %954 = vmatpush3.bf16.msra.mxu1 %v951_v13 }
 0x3bc   :  { %893 = vmatmul.mubr.msk.f32.vlgmr.msra.gmra.mrb[10].mxu1 %vm618_vm2, %v52_v14 }
 0x48f   :  { %v894_v18 = vpop.f32.mrb[10].mxu1 }
 0x490   :  { %v691_v19 = vpop.f32.mrb[11].mxu1 }
 0x491   :  { %v704_v20 = vadd.f32 %v702_v17, %v691_v19 }
 0x493   :  { %705 = vst [vmem:[#allocation5] sm:$0x1] %v704_v20 }
 0x494   :  { %1007 = shalt.err (!%p1004_p12)
}
 0x495   :  { %s1008_s8 = scalar_lea.hbm %s1175_s3, 16 }
 0x496   :  { %p1009_p13 = scmp.ne.s32.totalorder %s1175_s3, %s1008_s8  ;;  %p1012_p0 = scmp.lt.u32.totalorder %s1008_s8, %s1175_s3 }
 0x498   :  { %p1014_p1 = pnand %p1012_p0, %p1009_p13 }
 0x49a   :  { %1017 = shalt.err (!%p1014_p1)
}
 0x49b   :  { %715 = dma.vmem_to_hbm [thread:$0]  %s713_s4, 16, %s1175_s3, [#allocation4]  }
 0x49c   :  { %1020 = dma.done.wait [#allocation4], 16  }
 0x49d   :  { %1021 = vsyncadd [#allocation4], 4294967280 }
 0x49e   :  { %719 = vsyncpa [#allocation3], 1 }
 0x49f   :  { %720 = vsyncpa [#allocation4], 1 }

</bundles_post_ra>
